<compile_context>
chip_gen: v5e
topology: v5e:2x2
jax: 0.10.0
libtpu: 0.0.40
codegen_flags: <defaults>
</compile_context>

<pallas_src>
import functools

import jax
import jax.numpy as jnp
from jax import lax
from jax.experimental import pallas as pl
from jax.experimental.pallas import tpu as pltpu


# ---------------------------------------------------------------------------
# Small helpers
# ---------------------------------------------------------------------------

def _cdiv(a, b):
    return -(-a // b)


def _round_up(v, m):
    return ((v + m - 1) // m) * m


def _min_value(dtype):
    dtype = jnp.dtype(dtype)
    if jnp.issubdtype(dtype, jnp.floating):
        return jnp.asarray(-jnp.inf, dtype=dtype)
    return jnp.asarray(jnp.iinfo(dtype).min, dtype=dtype)


def _sublane_pack(itemsize):
    """Sublane rounding for a dtype: 8 for f32, 16 for bf16, 32 for int8/fp8."""
    return max(1, 32 // int(itemsize))


def _vmem_budget():
    """(per-input-block byte budget, vmem_limit_bytes), sized from the chip."""
    try:
        cap = int(pltpu.get_tpu_info().vmem_capacity_bytes)
    except Exception:  # noqa: BLE001  - fall back to the smallest (v7x) VMEM
        cap = 64 * 1024 * 1024
    vmem_limit = min(int(cap * 0.85), 100 * 1024 * 1024)
    # ~2x double-buffered input + ~2x output + intermediates + headroom.
    block_budget = min(vmem_limit // 6, 12 * 1024 * 1024)
    return block_budget, vmem_limit


def _lane_tile(ncp, bytes_per_row_per_lane, budget):
    """Largest lane tile tb = 128*d with d | (ncp // 128) whose single-row
    input block fits the budget.  Guarantees every block (including the last)
    is a dense multiple of 128 lanes -> unmasked vst."""
    m = ncp // 128
    best = 1
    for d in range(1, m + 1):
        if m % d == 0 and bytes_per_row_per_lane * 128 * d <= budget:
            best = d
    return 128 * best


# ---------------------------------------------------------------------------
# Fast path: stride == size (non-overlapping windows)
# ---------------------------------------------------------------------------

def _pool_fast_kernel(x_ref, o_ref, *, op, size, ncp, inv_kk):
    """x_ref: (toh, size, ow, size*ncp)   o_ref: (toh, ow, ncp)

    Window taps live on axis 1 (ki, non-minor -> cheap VPU reduce) and on
    128-aligned ncp-wide chunks of the lane axis (kj -> free vreg selection).
    """
    x = x_ref[...]
    if op == "avg":
        y = jnp.sum(x.astype(jnp.float32), axis=1)          # (toh, ow, size*ncp)
        acc = y[..., 0:ncp]
        for kj in range(1, size):
            acc = acc + y[..., kj * ncp:(kj + 1) * ncp]
        acc = acc * inv_kk
    else:  # max is exact: keep the native dtype (bf16 stays packed on v6e/v7x)
        y = jnp.max(x, axis=1)
        acc = y[..., 0:ncp]
        for kj in range(1, size):
            acc = jnp.maximum(acc, y[..., kj * ncp:(kj + 1) * ncp])
    o_ref[...] = acc.astype(o_ref.dtype)


def _pool_fast(xt, *, op, size, oh, ow):
    """xt: (oh*size, ow*size, ncp) channel-last -> (oh, ow, ncp).
    Returns None if even a single-output-row block would blow the VMEM budget
    (caller then uses the separable path, which can tile channels)."""
    hu, wu, ncp = xt.shape
    dtype = xt.dtype
    itemsize = jnp.dtype(dtype).itemsize
    sub = _sublane_pack(itemsize)
    budget, vmem_limit = _vmem_budget()
    kk = size * size

    # Free row-major reshape: (oh*size, ow*size, ncp) -> (oh, size, ow, size*ncp)
    xw = xt.reshape(oh, size, ow, size * ncp)

    # dtype-aware VMEM cost of one output row's input block.
    row_bytes = size * _round_up(ow, sub) * size * ncp * itemsize
    if row_bytes > budget:
        return None

    toh = max(1, min(oh, budget // row_bytes))
    if _cdiv(oh, toh) < 2 and oh >= 2:       # keep >=2 parallel steps for v7x megacore
        toh = _cdiv(oh, 2)
    grid = (_cdiv(oh, toh),)

    return pl.pallas_call(
        functools.partial(_pool_fast_kernel, op=op, size=size, ncp=ncp,
                          inv_kk=1.0 / kk),
        out_shape=jax.ShapeDtypeStruct((oh, ow, ncp), dtype),
        grid=grid,
        in_specs=[pl.BlockSpec((toh, size, ow, size * ncp),
                               lambda i: (i, 0, 0, 0))],
        out_specs=pl.BlockSpec((toh, ow, ncp), lambda i: (i, 0, 0)),
        compiler_params=pltpu.CompilerParams(
            dimension_semantics=("parallel",),
            vmem_limit_bytes=vmem_limit),
        cost_estimate=pl.CostEstimate(
            flops=kk * oh * ow * ncp, transcendentals=0,
            bytes_accessed=int((hu * wu * ncp + oh * ow * ncp) * itemsize)),
    )(xw)


# ---------------------------------------------------------------------------
# General path: separable 1-D pooling (pool W, then pool H)
# ---------------------------------------------------------------------------

def _pool1d_kernel(x_ref, o_ref, *, op, size, stride, out_len, axis, scale):
    """Reduce `size` taps spaced `stride` apart along `axis` in {0, 1} of a
    channel-last 3-D block; channels stay on the dense lane axis."""
    acc = None
    for k in range(size):
        if stride == 1:
            sl = pl.ds(k, out_len)
        else:
            # TODO(synk): strided window read (only for stride>1 non-default
            # configs); verify sublane-stride lowering on very old jax.
            sl = pl.ds(k, out_len, stride=stride)
        tap = x_ref[sl, :, :] if axis == 0 else x_ref[:, sl, :]
        if op == "avg":
            tap = tap.astype(jnp.float32)
            acc = tap if acc is None else acc + tap
        else:
            acc = tap if acc is None else jnp.maximum(acc, tap)
    if scale is not None:
        acc = acc * scale
    o_ref[...] = acc.astype(o_ref.dtype)


def _pool1d(xc, *, op, axis, size, stride, out_len, out_dtype, scale):
    """xc: (A, B, ncp) channel-last; pools `axis` (0 or 1) down to out_len."""
    A, B, ncp = xc.shape
    itemsize = jnp.dtype(xc.dtype).itemsize
    sub = _sublane_pack(itemsize)
    budget, vmem_limit = _vmem_budget()

    kernel = functools.partial(_pool1d_kernel, op=op, size=size, stride=stride,
                               out_len=out_len, axis=axis, scale=scale)

    if axis == 1:
        # Tile rows (A) and channels; the reduced axis (B) stays whole.
        row_unit = _round_up(B, sub) * itemsize            # one A-row, one lane
        tb = _lane_tile(ncp, row_unit, budget)
        ta = max(1, min(A, budget // (row_unit * tb)))
        if _cdiv(A, ta) * (ncp // tb) < 2 and A >= 2:
            ta = _cdiv(A, 2)
        grid = (_cdiv(A, ta), ncp // tb)
        in_spec = pl.BlockSpec((ta, B, tb), lambda i, j: (i, 0, j))
        out_spec = pl.BlockSpec((ta, out_len, tb), lambda i, j: (i, 0, j))
        out_shape = jax.ShapeDtypeStruct((A, out_len, ncp), out_dtype)
    else:
        # Tile the middle (sublane) axis and channels; the reduced axis (A)
        # stays whole.
        tb = _lane_tile(ncp, A * sub * itemsize, budget)
        cap_rows = budget // max(A * tb * itemsize, 1)
        tbb = min(B, max(sub, (cap_rows // sub) * sub))
        if _cdiv(B, tbb) * (ncp // tb) < 2 and B >= 2:
            tbb = _cdiv(B, 2)
        grid = (_cdiv(B, tbb), ncp // tb)
        in_spec = pl.BlockSpec((A, tbb, tb), lambda i, j: (0, i, j))
        out_spec = pl.BlockSpec((out_len, tbb, tb), lambda i, j: (0, i, j))
        out_shape = jax.ShapeDtypeStruct((out_len, B, ncp), out_dtype)

    return pl.pallas_call(
        kernel,
        out_shape=out_shape,
        grid=grid,
        in_specs=[in_spec],
        out_specs=out_spec,
        compiler_params=pltpu.CompilerParams(
            dimension_semantics=("parallel", "parallel"),
            vmem_limit_bytes=vmem_limit),
    )(xc)


# ---------------------------------------------------------------------------
# Wrapper (NCHW in -> NCHW out; matches nn.MaxPool2d / nn.AvgPool2d with
# count_include_pad=True)
# ---------------------------------------------------------------------------

def _pool2d_pallas(x, *, op, size, stride, padding):
    assert x.ndim == 4, "expected NCHW input"
    n, c, h, w = x.shape
    oh = (h + 2 * padding - size) // stride + 1
    ow = (w + 2 * padding - size) // stride + 1
    assert oh > 0 and ow > 0, "pooling window larger than (padded) input"

    if padding > 0:
        # TODO(synk): fold the edge handling into the kernels (iota masks) to
        # save this extra HBM pass; only taken when padding != 0.
        pad_val = _min_value(x.dtype) if op == "max" else jnp.asarray(0, x.dtype)
        x = jnp.pad(x, ((0, 0), (0, 0), (padding, padding), (padding, padding)),
                    constant_values=pad_val)

    nc = n * c
    ncp = _round_up(nc, 128)          # lane-dense loads and unmasked 128-wide stores
    hu = (oh - 1) * stride + size     # rows/cols actually read (floor-mode crop)
    wu = (ow - 1) * stride + size

    x3 = x.reshape(nc, x.shape[2], x.shape[3])[:, :hu, :wu]
    if ncp != nc:
        # Zero channel padding (cropped after the kernel). For very small N*C
        # this over-pads; fine for tiny tensors, dense lanes for big ones.
        x3 = jnp.pad(x3, ((0, ncp - nc), (0, 0), (0, 0)))

    # Channel-last re-layout: flattened (n, c) planes on the lane axis.
    # TODO(synk): this transpose + the inverse below are the dominant HBM cost
    # left; removing them needs a channel-last activation contract at the
    # model boundary (would change the module's NCHW interface).
    xt = jnp.transpose(x3, (1, 2, 0))                 # (hu, wu, ncp)

    out_cl = None
    if stride == size:
        out_cl = _pool_fast(xt, op=op, size=size, oh=oh, ow=ow)
    if out_cl is None:
        # Overlapping windows (or fast-path block too large for VMEM):
        # separable pooling -- pool W, then H. Intermediate ~input/size,
        # instead of the old kk*input taps materialization.
        kk = size * size
        mid_dtype = jnp.float32 if op == "avg" else x.dtype
        mid = _pool1d(xt, op=op, axis=1, size=size, stride=stride,
                      out_len=ow, out_dtype=mid_dtype, scale=None)
        out_cl = _pool1d(mid, op=op, axis=0, size=size, stride=stride,
                         out_len=oh, out_dtype=x.dtype,
                         scale=(1.0 / kk) if op == "avg" else None)

    # (OH, OW, NCp) -> (N, C, OH, OW)
    out = out_cl[:, :, :nc]
    return jnp.transpose(out, (2, 0, 1)).reshape(n, c, oh, ow)


class Pool:
    """JAX/Pallas port of reid.models.pool.Pool.

    The reference module's __factory dict is empty (its forward always raises
    KeyError). Here it is populated with Pallas-backed 'max' and 'avg'
    pooling so the forward pass is actually exercisable.
    avg with padding>0 follows PyTorch's default count_include_pad=True.
    """
    # TODO(synk): upstream __factory is empty; 'max'/'avg' entries here are
    # synthetic Pallas implementations (no checkpoint / registry to load).
    __factory = {
        "max": functools.partial(_pool2d_pallas, op="max"),
        "avg": functools.partial(_pool2d_pallas, op="avg"),
    }

    def __init__(self, name, size=2, stride=2, padding=0):
        self.name = name
        self.size = size
        self.stride = stride
        self.padding = padding

    def __call__(self, input_feature_map, *args):
        return self.forward(input_feature_map, *args)

    def forward(self, input_feature_map, *args):
        if self.name not in self.__factory.keys():
            raise KeyError("Unknown pooling module: {}".format(self.name))
        # NOTE: the reference forward forgets to pass input_feature_map to
        # the factory callable; we pass it so the op is actually computable.
        return self.__factory[self.name](
            input_feature_map,
            size=self.size, stride=self.stride, padding=self.padding,
        )

    def get_names(self):
        return self.__factory.keys()


if __name__ == "__main__":
    key = jax.random.PRNGKey(0)
    x = jax.random.normal(key, (2, 4, 16, 16), dtype=jnp.float32)  # NCHW

    # Default params (size=2, stride=2, padding=0) -> fast non-overlapping path.
    y_max = jax.block_until_ready(Pool("max")(x))
    y_avg = jax.block_until_ready(Pool("avg")(x))

    ref_max = lax.reduce_window(
        x, -jnp.inf, lax.max, (1, 1, 2, 2), (1, 1, 2, 2), "VALID")
    ref_avg = lax.reduce_window(
        x, 0.0, lax.add, (1, 1, 2, 2), (1, 1, 2, 2), "VALID") / 4.0
    assert y_max.shape == (2, 4, 8, 8) and y_avg.shape == (2, 4, 8, 8)
    assert y_max.dtype == x.dtype and y_avg.dtype == x.dtype
    assert jnp.allclose(y_max, ref_max, atol=1e-6)
    assert jnp.allclose(y_avg, ref_avg, atol=1e-6)

    # Overlapping-window + padding config -> separable (W then H) path.
    y_max3 = jax.block_until_ready(Pool("max", size=3, stride=1, padding=1)(x))
    ref_max3 = lax.reduce_window(
        x, -jnp.inf, lax.max, (1, 1, 3, 3), (1, 1, 1, 1),
        padding=((0, 0), (0, 0), (1, 1), (1, 1)))
    assert y_max3.shape == (2, 4, 16, 16)
    assert jnp.allclose(y_max3, ref_max3, atol=1e-6)

    y_avg3 = jax.block_until_ready(Pool("avg", size=3, stride=1, padding=1)(x))
    ref_avg3 = lax.reduce_window(
        x, 0.0, lax.add, (1, 1, 3, 3), (1, 1, 1, 1),
        padding=((0, 0), (0, 0), (1, 1), (1, 1))) / 9.0
    assert jnp.allclose(y_avg3, ref_avg3, atol=1e-5)

    print("KERNEL_OK")
</pallas_src>

<mosaic_0001>
module attributes {stable_mosaic.version = 11 : i64} {
  func.func @_pool_fast_kernel(%arg0: i32, %arg1: memref<4x2x8x256xf32, #tpu.memory_space<vmem>>, %arg2: memref<4x8x128xf32, #tpu.memory_space<vmem>>) attributes {dimension_semantics = [#tpu.dimension_semantics<parallel>], iteration_bounds = array<i64: 2>, scalar_prefetch = 0 : i64, scratch_operands = 0 : i64, tpu.core_type = #tpu.core_type<tc>, window_params = [{transform_indices = @transform_0, window_bounds = array<i64: 4, 2, 8, 256>}, {transform_indices = @transform_1, window_bounds = array<i64: 4, 8, 128>}]} {
    %c0 = arith.constant 0 : index
    %c0_0 = arith.constant 0 : index
    %c0_1 = arith.constant 0 : index
    %c0_2 = arith.constant 0 : index
    %0 = vector.load %arg1[%c0, %c0_0, %c0_1, %c0_2] : memref<4x2x8x256xf32, #tpu.memory_space<vmem>>, vector<4x2x8x256xf32>
    %cst = arith.constant dense<0xFF800000> : vector<4x8x256xf32>
    %1 = vector.multi_reduction <maximumf>, %0, %cst [1] : vector<4x2x8x256xf32> to vector<4x8x256xf32>
    %2 = vector.extract_strided_slice %1 {offsets = [0, 0, 0], sizes = [4, 8, 128], strides = [1, 1, 1]} : vector<4x8x256xf32> to vector<4x8x128xf32>
    %3 = vector.extract_strided_slice %1 {offsets = [0, 0, 128], sizes = [4, 8, 128], strides = [1, 1, 1]} : vector<4x8x256xf32> to vector<4x8x128xf32>
    %4 = arith.maximumf %2, %3 : vector<4x8x128xf32>
    %c0_3 = arith.constant 0 : index
    %c0_4 = arith.constant 0 : index
    %c0_5 = arith.constant 0 : index
    %5 = vector.load %arg2[%c0_3, %c0_4, %c0_5] : memref<4x8x128xf32, #tpu.memory_space<vmem>>, vector<4x8x128xf32>
    tpu.vector_store %arg2[%c0_3, %c0_4, %c0_5], %4 {strides = array<i32>} : memref<4x8x128xf32, #tpu.memory_space<vmem>>, vector<4x8x128xf32>,
    return
  }
  func.func @transform_0(%arg0: i32) -> (i32, i32, i32, i32) {
    %c0_i32 = arith.constant 0 : i32
    %c0_i32_0 = arith.constant 0 : i32
    %c0_i32_1 = arith.constant 0 : i32
    %c0_i32_2 = arith.constant 0 : i32
    return %arg0, %c0_i32, %c0_i32_0, %c0_i32_1 : i32, i32, i32, i32
  }
  func.func @transform_1(%arg0: i32) -> (i32, i32, i32) {
    %c0_i32 = arith.constant 0 : i32
    %c0_i32_0 = arith.constant 0 : i32
    %c0_i32_1 = arith.constant 0 : i32
    return %arg0, %c0_i32, %c0_i32_0 : i32, i32, i32
  }
}

</mosaic_0001>

<bundles_post_ra>
// kernel: tpu_custom_call.1
= control target key start
LH: loop header
LB: loop body
LE: loop exit
PB: predicated region body
PF: predicated region fallthrough
CT: control target
= control target key end

     0   :  { %6 = vsyncpa [#allocation3], 0  ;;  %s587_s0 = inlined_call_operand.hbm [shape: f32[8,2,8,256], index: 0, kind: input, shape index: {}]   ;;  %s588_s1 = inlined_call_operand.hbm [shape: f32[8,8,128], index: 1, kind: output, shape index: {}]  }
   0x1   :  { %8 = vsyncpa [#allocation3 + $0x1], 0 }
   0x2   :  { %9 = vsyncpa [#allocation4], 0 }
   0x3   :  { %11 = vsyncpa [#allocation4 + $0x1], 0  ;;  %s441_s6 = smov 0   ;;  %s443_s7 = smov 0  }
   0x4   :  { %s445_s8 = smov 0   ;;  %s447_s9 = smov 0  }
   0x5 LB: > { %s462_s10 = sadd.s32 4294967295, %s425_s9   ;;  %s261_s11 = sadd.s32 4294967294, %s425_s9   ;;  %s425_s9 = sphi %s447_s9, %s598_s9   ;;  %s421_s8 = sphi %s445_s8, %s597_s8   ;;  %s417_s7 = sphi %s443_s7, %s596_s7   ;;  %s413_s6 = sphi %s441_s6, %s595_s6  }
   0x6   : > { %s466_s12 = sadd.s32 1, %s425_s9   ;;  %s24_s13 = sadd.s32 1, %s421_s8 }
   0x7   : > { %s21_s14 = ssub.s32 %s425_s9, %s466_s12  ;;  %p31_p0 = scmp.ne.s32.totalorder %s421_s8, %s417_s7 }
   0x8   : > { %p22_p1 = scmp.eq.s32.totalorder %s21_s14, 0  ;;  %p32_p2 = scmp.eq.s32.totalorder %s425_s9, 0 }
   0x9   : > { %p37_p3 = scmp.ne.s32.totalorder %s417_s7, %s413_s6  ;;  %p38_p4 = scmp.eq.s32.totalorder %s462_s10, 0 }
   0xa   : > { %s478_s15 = scalar_select %p22_p1, %s421_s8, %s24_s13  }
   0xb   : > { %p480_p5 = por %p32_p2, %p31_p0  ;;  %p484_p6 = por %p38_p4, %p37_p3 }
   0xc   : > { %p61_p7 = scmp.eq.s32.totalorder %s462_s10, 1  ;;  %p67_p8 = scmp.eq.s32.totalorder %s261_s11, 1 }
   0xd   : > { %p291_p10 = scmp.lt.s32.totalorder %s425_s9, 2  ;;  %s87_s20 = sand.u32 1, %s421_s8  }
   0xe   : > { %p491_p11 = por %p61_p7, %p31_p0  ;;  %p495_p12 = por %p67_p8, %p37_p3 }
   0xf   : > { %s277_s21 = sshll.u32 %s425_s9, 7  ;;  %s264_s22 = sshll.u32 %s87_s20, 7 }
  0x10   : > { %s97_s25 = scalar_lea.hbm %s587_s0, %s277_s21  ;;  %s91_s27 = scalar_lea.vmem [#allocation2], %s264_s22 }
  0x11   : > { %s98_s26 = sshll.u32 %s97_s25, 4  ;;  %s100_s28 = sshll.u32 %s91_s27, 4  ;;  %s99_s26 = int_to_ptr.hbm [resolvable:$true] %s98_s26  ;;  %s101_s28 = int_to_ptr.vmem [resolvable:$true] %s100_s28 }
  0x12   : > { %p506_p13 = pnand %p291_p10, %p480_p5  ;;  %p268_p0 = scmp.ge.s32.totalorder %s425_s9, 1 }
  0x13   : > { %p108_p1 = scmp.lt.s32.totalorder %s425_s9, 3  ;;  %s88_s30 = scalar_lea.sflag [#allocation3], %s87_s20 }
  0x14   : > { %s329_s2 = sshra.s32 %s99_s26, 4  ;;  %p333_p3 = pneg %p506_p13  ;;  %s330_s2 = int_to_ptr.hbm [resolvable:$true] %s329_s2 }
  0x15   : > { %s331_s3 = scalar_lea.hbm %s330_s2, 128  ;;  %s336_s11 = scalar_lea.hbm %s587_s0, 256 }
  0x16   : > { %p332_p2 = scmp.ne.s32.totalorder %s330_s2, %s331_s3  ;;  %p337_p5 = scmp.lt.s32.totalorder %s330_s2, %s587_s0 }
  0x17   : > { %p338_p8 = scmp.lt.s32.totalorder %s336_s11, %s331_s3 }
  0x18   : > { %p334_p4 = pnand %p333_p3, %p332_p2 }
  0x19   : > { %p339_p10 = por %p338_p8, %p337_p5 }
  0x1a   : > { %p335_p7 = pneg %p334_p4 }
  0x1c   : > { %p340_p9 = pnand %p339_p10, %p335_p7 }
  0x1e   : > { %343 = shalt.err (!%p340_p9)
}
  0x1f   : > { %s427_s16 = smov 256   ;;  %s428_s20 = smov 16  }
  0x20   : > { %286 = dma.hbm_to_vmem [thread:$0]  (!%p506_p13), %s99_s26, 2048, %s101_s28, %s88_s30, %s427_s16, %s427_s16, %s428_s20  }
  0x21   : > { %p109_p2 = pnand %p268_p0, %p108_p1 }
  0x22   : > { %s527_s21 = sand.u32 (!%p109_p2), 1, %s417_s7  }
  0x23   : > { %112 = sbr.rel (%p109_p2) target bundleno = 57 (0x39), region = 24  ;;  %s269_s22 = sshll.u32 (!%p109_p2), %s527_s21, 7 }
  0x24   : > { %s115_s23 = scalar_lea.sflag (!%p109_p2), [#allocation3], %s527_s21  ;;  %s531_s24 = scalar_lea.vmem (!%p109_p2), [#allocation2], %s269_s22 }
  0x28   : > { %404 = dma.done.wait (%p484_p6), %s115_s23, 2048  }
  0x29   : > { %406 = vsyncadd (%p484_p6), %s115_s23, 4294965248  ;;  %s270_s25 = sshll.u32 %s527_s21, 5  ;;  %s278_s26 = sshll.u32 %s462_s10, 5  ;;  %v140_v0 = vld [vmem:[%s531_s24] sm:$0xff]  ;;  %v141_v1 = vld [vmem:[%s531_s24 + $0x8] sm:$0xff] }
  0x2a   : > { %v142_v2 = vld [vmem:[%s531_s24 + $0x10] sm:$0xff]  ;;  %v143_v3 = vld [vmem:[%s531_s24 + $0x18] sm:$0xff]  ;;  %v144_v5 = vld [vmem:[%s531_s24 + $0x20] sm:$0xff]  ;;  %s184_s28 = scalar_lea.hbm %s588_s1, %s278_s26  ;;  %s137_s10 = scalar_lea.vmem [#allocation5], %s270_s25 }
  0x2b   : > { %v156_v4 = vmax.f32 %v140_v0, %v142_v2  ;;  %v145_v6 = vld [vmem:[%s531_s24 + $0x28] sm:$0xff]  ;;  %v157_v7 = vmax.f32 %v141_v1, %v143_v3  ;;  %v146_v8 = vld [vmem:[%s531_s24 + $0x30] sm:$0xff]  ;;  %v147_v9 = vld [vmem:[%s531_s24 + $0x38] sm:$0xff]  ;;  %s185_s29 = sshll.u32 %s137_s10, 4  ;;  %s187_s30 = sshll.u32 %s184_s28, 4  ;;  %s186_s29 = int_to_ptr.vmem [resolvable:$true] %s185_s29  ;;  %s188_s30 = int_to_ptr.hbm [resolvable:$true] %s187_s30 }
  0x2c   : > { %v148_v10 = vld [vmem:[%s531_s24 + $0x40] sm:$0xff]  ;;  %v158_v11 = vmax.f32 %v144_v5, %v146_v8  ;;  %v159_v12 = vmax.f32 %v145_v6, %v147_v9  ;;  %v149_v13 = vld [vmem:[%s531_s24 + $0x48] sm:$0xff]  ;;  %v150_v14 = vld [vmem:[%s531_s24 + $0x50] sm:$0xff]  ;;  %s173_s2 = scalar_lea.sflag [#allocation4], %s527_s21  ;;  %s373_s3 = sshra.s32 %s188_s30, 4  ;;  %s374_s3 = int_to_ptr.hbm [resolvable:$true] %s373_s3 }
  0x2d   : > { %v151_v15 = vld [vmem:[%s531_s24 + $0x58] sm:$0xff]  ;;  %v164_v16 = vmax.f32 %v156_v4, %v157_v7  ;;  %v160_v17 = vmax.f32 %v148_v10, %v150_v14  ;;  %v152_v19 = vld [vmem:[%s531_s24 + $0x60] sm:$0xff]  ;;  %v153_v20 = vld [vmem:[%s531_s24 + $0x68] sm:$0xff]  ;;  %s375_s4 = scalar_lea.hbm %s374_s3, 32  ;;  %s379_s13 = scalar_lea.hbm %s588_s1, 64 }
  0x2e   : > { %v161_v18 = vmax.f32 %v149_v13, %v151_v15  ;;  %v154_v21 = vld [vmem:[%s531_s24 + $0x70] sm:$0xff]  ;;  %v165_v22 = vmax.f32 %v158_v11, %v159_v12  ;;  %v155_v23 = vld [vmem:[%s531_s24 + $0x78] sm:$0xff]  ;;  %p376_p6 = scmp.ne.s32.totalorder %s374_s3, %s375_s4  ;;  %p380_p0 = scmp.lt.s32.totalorder %s374_s3, %s588_s1 }
  0x2f   : > { %v162_v24 = vmax.f32 %v152_v19, %v154_v21  ;;  %168 = vst [vmem:[%s137_s10] sm:$0xff] %v164_v16  ;;  %v163_v26 = vmax.f32 %v153_v20, %v155_v23  ;;  %p381_p1 = scmp.lt.s32.totalorder %s379_s13, %s375_s4 }
  0x30   : > { %v166_v25 = vmax.f32 %v160_v17, %v161_v18  ;;  %169 = vst [vmem:[%s137_s10 + $0x8] sm:$0xff] %v165_v22  ;;  %p377_p9 = pnand %p376_p6, %p491_p11 }
  0x31   : > { %v167_v27 = vmax.f32 %v162_v24, %v163_v26  ;;  %p382_p3 = por %p381_p1, %p380_p0 }
  0x32   : > { %170 = vst [vmem:[%s137_s10 + $0x10] sm:$0xff] %v166_v25  ;;  %p378_p13 = pneg %p377_p9 }
  0x33   : > { %171 = vst [vmem:[%s137_s10 + $0x18] sm:$0xff] %v167_v27 }
  0x34   : > { %p383_p4 = pnand %p382_p3, %p378_p13 }
  0x36   : > { %386 = shalt.err (!%p383_p4)
}
  0x37   : > { %s429_s20 = smov 128   ;;  %s430_s21 = smov 8  }
  0x38   : > { %281 = dma.vmem_to_hbm [thread:$0]  (%p491_p11), %s186_s29, 512, %s188_s30, %s173_s2, %s429_s20, %s429_s20, %s430_s21  }
  0x39 PF: > { %s202_s22 = sand.u32 1, %s413_s6   ;;  %p594_p7 = scmp.ge.s32.totalorder %s425_s9, 2 }
  0x3a   : > { %s203_s23 = scalar_lea.sflag [#allocation4], %s202_s22 }
  0x3b   : > { %p288_p5 = pnand %p594_p7, %p495_p12 }
  0x3d   : > { %p289_p8 = pneg %p288_p5 }
  0x3f   : > { %408 = dma.done.wait (%p289_p8), %s203_s23, 512  }
  0x40   : > { %410 = vsyncadd (%p289_p8), %s203_s23, 4294966784  ;;  %p14_p10 = scmp.ge.s32.totalorder %s466_s12, 4   ;;  %s595_s6 = smov %s417_s7 }
  0x41   : > { %s596_s7 = smov %s421_s8  ;;  %s597_s8 = smov %s478_s15 }
  0x42   : > { %s598_s9 = smov %s466_s12  ;;  %16 = sbr.rel (!%p14_p10) target bundleno = 5 (0x5), region = 69 }
  0x47   :  { %209 = vsyncpa [#allocation3], 1 }
  0x48   :  { %211 = vsyncpa [#allocation3 + $0x1], 1 }
  0x49   :  { %212 = vsyncpa [#allocation4], 1 }
  0x4a   :  { %214 = vsyncpa [#allocation4 + $0x1], 1 }

</bundles_post_ra>
